<compile_context>
chip_gen: v5e
topology: v5e:2x2
jax: 0.10.0
libtpu: 0.0.40
codegen_flags: <defaults>
</compile_context>

<pallas_src>
import functools

import jax
import jax.numpy as jnp
from jax.experimental import pallas as pl
from jax.experimental.pallas import tpu as pltpu

LANE = 128
TILE_M_1CORE = 1024       # rows per grid step on single-TC chips (v5e/v6e)
TILE_M_MULTICORE = 2048   # bigger tiles on v7x (3.2 TB/s -> amortize step cost)


def _cdiv(a, b):
    return -(-a // b)


def _round_up(a, b):
    return _cdiv(a, b) * b


@functools.lru_cache(maxsize=None)
def _num_tensorcores():
    """Best-effort TensorCore count (v7x has 2/chip; v5e/v6e have 1)."""
    try:
        info = pltpu.get_tpu_info()
    except Exception:
        return 1
    for name in ("num_cores", "core_count", "num_tensorcores",
                 "tensor_core_count"):
        v = getattr(info, name, None)
        try:
            v = int(v)
        except (TypeError, ValueError):
            continue
        if v >= 1:
            return v
    return 1


def _loss_sums_kernel(pred_ref, tgt_ref, mask_ref, xt_ref, out_ref,
                      acc_obj, acc_bg, acc_xt, acc_ob,
                      *, rows, tile_m, need_mask):
    """Accumulate the four sums TotalLoss needs.

    out_ref (SMEM, (1, 4) f32) per split c:
      [0] sum((pred*mask     - target*mask)^2)
      [1] sum((pred*(1-mask) - target*(1-mask))^2)
      [2] sum(x_T^2)
      [3] sum((pred*mask - pred*(1-mask))^2)

    NOTE: the rewrites mask*(pred-tgt) and pred*(2*mask-1) are exact for the
    binary masks this loss is defined on; for fractional masks they differ
    from the PyTorch formulation only at ~ulp level.
    """
    c = pl.program_id(0)
    i = pl.program_id(1)
    n_inner = pl.num_programs(1)

    @pl.when(i == 0)
    def _init():
        acc_obj[...] = jnp.zeros_like(acc_obj)
        acc_bg[...] = jnp.zeros_like(acc_bg)
        acc_xt[...] = jnp.zeros_like(acc_xt)
        acc_ob[...] = jnp.zeros_like(acc_ob)

    def _fold(x):
        # (tile_m, 128) -> (8, 128): pure-VPU partial reduction so the
        # accumulators stay tiny and independent of the tile size.
        return jnp.sum(x.reshape(tile_m // 8, 8, LANE), axis=0)

    def _accumulate(masked):
        # Widen to f32 only after the load (free VPU work, no HBM cost).
        pred = pred_ref[...].astype(jnp.float32)
        tgt = tgt_ref[...].astype(jnp.float32)
        m = mask_ref[...].astype(jnp.float32)
        xt = xt_ref[...].astype(jnp.float32)
        if masked:
            # Zero rows past the true extent: covers the partial last tile
            # and fully-out-of-range (clamped) tiles of the split axis.
            # Selects (not a weight multiply) so unspecified OOB bits
            # (possibly NaN/Inf) cannot leak into the sums.
            row0 = (c * n_inner + i) * tile_m
            row = jax.lax.broadcasted_iota(jnp.int32, (tile_m, LANE), 0) + row0
            valid = row < rows
            pred = jnp.where(valid, pred, 0.0)
            tgt = jnp.where(valid, tgt, 0.0)
            m = jnp.where(valid, m, 0.0)
            xt = jnp.where(valid, xt, 0.0)
        d = pred - tgt
        md = m * d                      # (pred - tgt) * mask
        d_bg = d - md                   # (pred - tgt) * (1 - mask)
        d_ob = pred * (2.0 * m - 1.0)   # pred*mask - pred*(1-mask)
        acc_obj[...] += _fold(md * md)
        acc_bg[...] += _fold(d_bg * d_bg)
        acc_xt[...] += _fold(xt * xt)
        acc_ob[...] += _fold(d_ob * d_ob)

    if need_mask:
        is_partial = (c * n_inner + i + 1) * tile_m > rows

        @pl.when(jnp.logical_not(is_partial))
        def _full():
            _accumulate(masked=False)

        @pl.when(is_partial)
        def _partial():
            _accumulate(masked=True)
    else:
        _accumulate(masked=False)

    # Cross-lane/sublane reduce + SMEM store only once per split.
    @pl.when(i == n_inner - 1)
    def _finalize():
        out_ref[0, 0] = jnp.sum(acc_obj[...])
        out_ref[0, 1] = jnp.sum(acc_bg[...])
        out_ref[0, 2] = jnp.sum(acc_xt[...])
        out_ref[0, 3] = jnp.sum(acc_ob[...])


def _as_rows(a, rows):
    """Flatten to (rows, LANE) in the array's NATIVE dtype.

    Free reshape when the element count already fills rows*LANE (the common
    NCHW case); otherwise a small zero-pad copy of the flat array (zeros are
    numerically neutral for every accumulated term).
    """
    flat = a.reshape(-1)
    want = rows * LANE
    if flat.shape[0] != want:
        # TODO(synk): the rare unaligned path still materializes one padded
        # copy per tensor; a fully copy-free variant would need 1-D BlockSpecs.
        flat = jnp.pad(flat, (0, want - flat.shape[0]))
    return flat.reshape(rows, LANE)


@jax.jit
def _loss_sums(pred, tgt, mask, x_t):
    n_elem = pred.size
    inputs = (pred, tgt, mask, x_t)

    # Sublane alignment: 8 rows for 32-bit, 16 for 16-bit, 32 for 8-bit dtypes.
    min_itemsize = min(jnp.dtype(a.dtype).itemsize for a in inputs)
    row_align = max(8, 32 // max(1, min_itemsize))

    num_cores = _num_tensorcores()
    tile_max = TILE_M_MULTICORE if num_cores >= 2 else TILE_M_1CORE

    rows = _round_up(_cdiv(n_elem, LANE), row_align)
    tile_m = min(tile_max, rows)
    grid_m = _cdiv(rows, tile_m)
    n_split = 2 if num_cores >= 2 else 1
    n_split = max(1, min(n_split, grid_m))
    g2 = _cdiv(grid_m, n_split)
    # Mask whenever the grid over-covers the rows (partial last tile) or the
    # split axis produces clamped duplicate blocks.
    need_mask = (n_split * g2 != grid_m) or (grid_m * tile_m != rows)
    assert n_split * g2 * tile_m >= rows

    args = [_as_rows(a, rows) for a in inputs]

    def in_map(c, i):
        # Clamp so the block index stays in range; out-of-range work is fully
        # masked inside the kernel (need_mask is guaranteed True then).
        return (jnp.minimum(c * g2 + i, grid_m - 1), 0)

    in_specs = [pl.BlockSpec((tile_m, LANE), in_map) for _ in args]

    kernel = functools.partial(
        _loss_sums_kernel, rows=rows, tile_m=tile_m, need_mask=need_mask)

    if n_split > 1:
        # Only CORE_PARALLEL actually shards a grid axis across TensorCores.
        dim_sems = (pltpu.CORE_PARALLEL, pltpu.ARBITRARY)
    else:
        dim_sems = ("arbitrary", "arbitrary")

    bytes_accessed = sum(int(a.size) * jnp.dtype(a.dtype).itemsize for a in args)
    cost = pl.CostEstimate(flops=16 * rows * LANE, transcendentals=0,
                           bytes_accessed=bytes_accessed + n_split * 16)

    partials = pl.pallas_call(
        kernel,
        out_shape=jax.ShapeDtypeStruct((n_split, 4), jnp.float32),
        grid=(n_split, g2),
        in_specs=in_specs,
        out_specs=pl.BlockSpec((1, 4), lambda c, i: (c, 0),
                               memory_space=pltpu.MemorySpace.SMEM),
        scratch_shapes=[pltpu.VMEM((8, LANE), jnp.float32)] * 4,
        compiler_params=pltpu.CompilerParams(
            dimension_semantics=dim_sems,
            vmem_limit_bytes=32 * 1024 * 1024),
        cost_estimate=cost,
    )(*args)

    return jnp.sum(partials, axis=0)   # (4,)


def total_loss(pred_noise, target_noise, mask, beta1, beta2, x_T):
    """JAX/Pallas equivalent of TotalLoss.forward -> (total, parts dict)."""
    n_elem = jnp.float32(pred_noise.size)
    beta1 = jnp.float32(beta1)
    beta2 = jnp.float32(beta2)

    s1, s2, s3, s4 = _loss_sums(pred_noise, target_noise, mask, x_T)

    # DiffusionLoss: beta1 * MSE(obj) + beta2 * MSE(bg)
    sample_loss = beta1 * (s1 / n_elem) + beta2 * (s2 / n_elem)

    # VLB: KL( N(x_T, sqrt(b1+b2)) || N(0, 1) ).mean()
    std1_sq = beta1 + beta2
    vlb_loss = jnp.log(1.0 / jnp.sqrt(std1_sq)) + (std1_sq + s3 / n_elem) / 2.0 - 0.5

    # diff: 1 / (KL( N(pred*mask, sqrt(b1)) || N(pred*(1-mask), sqrt(b2)) ).mean() + 1e-6)
    kl_diff_mean = (jnp.log(jnp.sqrt(beta2) / jnp.sqrt(beta1))
                    + (beta1 + s4 / n_elem) / (2.0 * beta2) - 0.5)
    diff_loss = 1.0 / (kl_diff_mean + 1e-6)

    total = sample_loss + vlb_loss + diff_loss
    # NOTE: PyTorch's .item() host sync is intentionally NOT reproduced; jnp
    # scalars are returned so this stays usable under jit / grad.
    return total, {
        "sample_loss": sample_loss,
        "vlb_loss": vlb_loss,
        "diff_loss": diff_loss,
    }


def _reference(pred, tgt, mask, beta1, beta2, x_T):
    """Pure-JAX reference mirroring the PyTorch code exactly (f32 math)."""
    pred = pred.astype(jnp.float32)
    tgt = tgt.astype(jnp.float32)
    mask = mask.astype(jnp.float32)
    x_T = x_T.astype(jnp.float32)

    def kl(d1, d2):
        m1, s1 = d1
        m2, s2 = d2
        return jnp.log(s2 / s1) + (s1 ** 2 + (m1 - m2) ** 2) / (2 * s2 ** 2) - 0.5

    obj = jnp.mean((pred * mask - tgt * mask) ** 2)
    bg = jnp.mean((pred * (1 - mask) - tgt * (1 - mask)) ** 2)
    sample = beta1 * obj + beta2 * bg
    vlb = jnp.mean(kl((x_T, jnp.sqrt(beta1 + beta2)),
                      (jnp.zeros_like(x_T), jnp.ones_like(x_T))))
    diff = 1.0 / (jnp.mean(kl((pred * mask, jnp.sqrt(beta1)),
                              (pred * (1 - mask), jnp.sqrt(beta2)))) + 1e-6)
    return sample + vlb + diff


def _check(shape, key, beta1, beta2, dtype=jnp.float32, mask_dtype=jnp.float32,
           tol=1e-4):
    k1, k2, k3, k4 = jax.random.split(key, 4)
    pred = jax.random.normal(k1, shape, dtype=jnp.float32).astype(dtype)
    tgt = jax.random.normal(k2, shape, dtype=jnp.float32).astype(dtype)
    mask = (jax.random.uniform(k3, shape) > 0.5).astype(mask_dtype)
    x_T = jax.random.normal(k4, shape, dtype=jnp.float32).astype(dtype)

    total, _parts = total_loss(pred, tgt, mask, beta1, beta2, x_T)
    total = jax.block_until_ready(total)
    ref = jax.block_until_ready(_reference(pred, tgt, mask, beta1, beta2, x_T))
    assert jnp.allclose(total, ref, rtol=tol, atol=tol), (shape, dtype, total, ref)


if __name__ == "__main__":
    key = jax.random.PRNGKey(0)
    k_a, k_b, k_c, k_d = jax.random.split(key, 4)
    beta1, beta2 = 0.3, 0.7

    # Primary case: NCHW, lane-aligned f32 (free reshape, no mask, no pad).
    _check((2, 4, 16, 16), k_a, beta1, beta2)
    # Non-lane-aligned size: exercises the pad fallback.
    _check((2, 3, 17, 9), k_b, beta1, beta2)
    # Native bf16 streaming (inputs + mask stay bf16 in HBM, widened in-kernel).
    _check((2, 4, 16, 16), k_c, beta1, beta2,
           dtype=jnp.bfloat16, mask_dtype=jnp.bfloat16, tol=1e-3)
    # Multi-tile case with a partial last tile: exercises the pl.when-gated
    # tail mask and the streaming accumulators across several grid steps.
    _check((2, 8, 160, 128), k_d, beta1, beta2)

    print("KERNEL_OK")
</pallas_src>

<mosaic_0001>
module attributes {stable_mosaic.version = 11 : i64} {
  func.func @_loss_sums_kernel(%arg0: i32, %arg1: i32, %arg2: memref<16x128xf32, #tpu.memory_space<vmem>>, %arg3: memref<16x128xf32, #tpu.memory_space<vmem>>, %arg4: memref<16x128xf32, #tpu.memory_space<vmem>>, %arg5: memref<16x128xf32, #tpu.memory_space<vmem>>, %arg6: memref<1x4xf32, #tpu.memory_space<smem>>, %arg7: memref<8x128xf32, #tpu.memory_space<vmem>>, %arg8: memref<8x128xf32, #tpu.memory_space<vmem>>, %arg9: memref<8x128xf32, #tpu.memory_space<vmem>>, %arg10: memref<8x128xf32, #tpu.memory_space<vmem>>) attributes {dimension_semantics = [#tpu.dimension_semantics<arbitrary>, #tpu.dimension_semantics<arbitrary>], iteration_bounds = array<i64: 1, 1>, scalar_prefetch = 0 : i64, scratch_operands = 4 : i64, tpu.core_type = #tpu.core_type<tc>, window_params = [{transform_indices = @transform_0, window_bounds = array<i64: 16, 128>}, {transform_indices = @transform_1, window_bounds = array<i64: 16, 128>}, {transform_indices = @transform_2, window_bounds = array<i64: 16, 128>}, {transform_indices = @transform_3, window_bounds = array<i64: 16, 128>}, {transform_indices = @transform_4, window_bounds = array<i64: 1, 4>}]} {
    %c0_i32 = arith.constant 0 : i32
    %0 = arith.cmpi eq, %arg1, %c0_i32 : i32
    %1 = arith.extui %0 : i1 to i32
    %c0_i32_0 = arith.constant 0 : i32
    %2 = arith.cmpi ne, %1, %c0_i32_0 : i32
    scf.if %2 {
      %cst_31 = arith.constant 0.000000e+00 : f32
      %42 = vector.broadcast %cst_31 : f32 to vector<8x128xf32>
      %c0_32 = arith.constant 0 : index
      %c0_33 = arith.constant 0 : index
      %43 = vector.load %arg7[%c0_32, %c0_33] : memref<8x128xf32, #tpu.memory_space<vmem>>, vector<8x128xf32>
      tpu.vector_store %arg7[%c0_32, %c0_33], %42 {strides = array<i32>} : memref<8x128xf32, #tpu.memory_space<vmem>>, vector<8x128xf32>,
      %cst_34 = arith.constant 0.000000e+00 : f32
      %44 = vector.broadcast %cst_34 : f32 to vector<8x128xf32>
      %c0_35 = arith.constant 0 : index
      %c0_36 = arith.constant 0 : index
      %45 = vector.load %arg8[%c0_35, %c0_36] : memref<8x128xf32, #tpu.memory_space<vmem>>, vector<8x128xf32>
      tpu.vector_store %arg8[%c0_35, %c0_36], %44 {strides = array<i32>} : memref<8x128xf32, #tpu.memory_space<vmem>>, vector<8x128xf32>,
      %cst_37 = arith.constant 0.000000e+00 : f32
      %46 = vector.broadcast %cst_37 : f32 to vector<8x128xf32>
      %c0_38 = arith.constant 0 : index
      %c0_39 = arith.constant 0 : index
      %47 = vector.load %arg9[%c0_38, %c0_39] : memref<8x128xf32, #tpu.memory_space<vmem>>, vector<8x128xf32>
      tpu.vector_store %arg9[%c0_38, %c0_39], %46 {strides = array<i32>} : memref<8x128xf32, #tpu.memory_space<vmem>>, vector<8x128xf32>,
      %cst_40 = arith.constant 0.000000e+00 : f32
      %48 = vector.broadcast %cst_40 : f32 to vector<8x128xf32>
      %c0_41 = arith.constant 0 : index
      %c0_42 = arith.constant 0 : index
      %49 = vector.load %arg10[%c0_41, %c0_42] : memref<8x128xf32, #tpu.memory_space<vmem>>, vector<8x128xf32>
      tpu.vector_store %arg10[%c0_41, %c0_42], %48 {strides = array<i32>} : memref<8x128xf32, #tpu.memory_space<vmem>>, vector<8x128xf32>,
    } else {
    }
    %c0 = arith.constant 0 : index
    %c0_1 = arith.constant 0 : index
    %3 = vector.load %arg2[%c0, %c0_1] : memref<16x128xf32, #tpu.memory_space<vmem>>, vector<16x128xf32>
    %c0_2 = arith.constant 0 : index
    %c0_3 = arith.constant 0 : index
    %4 = vector.load %arg3[%c0_2, %c0_3] : memref<16x128xf32, #tpu.memory_space<vmem>>, vector<16x128xf32>
    %c0_4 = arith.constant 0 : index
    %c0_5 = arith.constant 0 : index
    %5 = vector.load %arg4[%c0_4, %c0_5] : memref<16x128xf32, #tpu.memory_space<vmem>>, vector<16x128xf32>
    %c0_6 = arith.constant 0 : index
    %c0_7 = arith.constant 0 : index
    %6 = vector.load %arg5[%c0_6, %c0_7] : memref<16x128xf32, #tpu.memory_space<vmem>>, vector<16x128xf32>
    %7 = arith.subf %3, %4 : vector<16x128xf32>
    %8 = arith.mulf %5, %7 : vector<16x128xf32>
    %9 = arith.subf %7, %8 : vector<16x128xf32>
    %cst = arith.constant 2.000000e+00 : f32
    %10 = vector.broadcast %cst : f32 to vector<16x128xf32>
    %11 = arith.mulf %10, %5 : vector<16x128xf32>
    %cst_8 = arith.constant 1.000000e+00 : f32
    %12 = vector.broadcast %cst_8 : f32 to vector<16x128xf32>
    %13 = arith.subf %11, %12 : vector<16x128xf32>
    %14 = arith.mulf %3, %13 : vector<16x128xf32>
    %c0_9 = arith.constant 0 : index
    %c0_10 = arith.constant 0 : index
    %15 = vector.load %arg7[%c0_9, %c0_10] : memref<8x128xf32, #tpu.memory_space<vmem>>, vector<8x128xf32>
    %16 = arith.mulf %8, %8 : vector<16x128xf32>
    %17 = vector.shape_cast %16 : vector<16x128xf32> to vector<2x8x128xf32>
    %cst_11 = arith.constant dense<0.000000e+00> : vector<8x128xf32>
    %18 = vector.multi_reduction <add>, %17, %cst_11 [0] : vector<2x8x128xf32> to vector<8x128xf32>
    %19 = arith.addf %15, %18 : vector<8x128xf32>
    %c0_12 = arith.constant 0 : index
    %c0_13 = arith.constant 0 : index
    %20 = vector.load %arg7[%c0_12, %c0_13] : memref<8x128xf32, #tpu.memory_space<vmem>>, vector<8x128xf32>
    tpu.vector_store %arg7[%c0_12, %c0_13], %19 {strides = array<i32>} : memref<8x128xf32, #tpu.memory_space<vmem>>, vector<8x128xf32>,
    %c0_14 = arith.constant 0 : index
    %c0_15 = arith.constant 0 : index
    %21 = vector.load %arg8[%c0_14, %c0_15] : memref<8x128xf32, #tpu.memory_space<vmem>>, vector<8x128xf32>
    %22 = arith.mulf %9, %9 : vector<16x128xf32>
    %23 = vector.shape_cast %22 : vector<16x128xf32> to vector<2x8x128xf32>
    %cst_16 = arith.constant dense<0.000000e+00> : vector<8x128xf32>
    %24 = vector.multi_reduction <add>, %23, %cst_16 [0] : vector<2x8x128xf32> to vector<8x128xf32>
    %25 = arith.addf %21, %24 : vector<8x128xf32>
    %c0_17 = arith.constant 0 : index
    %c0_18 = arith.constant 0 : index
    %26 = vector.load %arg8[%c0_17, %c0_18] : memref<8x128xf32, #tpu.memory_space<vmem>>, vector<8x128xf32>
    tpu.vector_store %arg8[%c0_17, %c0_18], %25 {strides = array<i32>} : memref<8x128xf32, #tpu.memory_space<vmem>>, vector<8x128xf32>,
    %c0_19 = arith.constant 0 : index
    %c0_20 = arith.constant 0 : index
    %27 = vector.load %arg9[%c0_19, %c0_20] : memref<8x128xf32, #tpu.memory_space<vmem>>, vector<8x128xf32>
    %28 = arith.mulf %6, %6 : vector<16x128xf32>
    %29 = vector.shape_cast %28 : vector<16x128xf32> to vector<2x8x128xf32>
    %cst_21 = arith.constant dense<0.000000e+00> : vector<8x128xf32>
    %30 = vector.multi_reduction <add>, %29, %cst_21 [0] : vector<2x8x128xf32> to vector<8x128xf32>
    %31 = arith.addf %27, %30 : vector<8x128xf32>
    %c0_22 = arith.constant 0 : index
    %c0_23 = arith.constant 0 : index
    %32 = vector.load %arg9[%c0_22, %c0_23] : memref<8x128xf32, #tpu.memory_space<vmem>>, vector<8x128xf32>
    tpu.vector_store %arg9[%c0_22, %c0_23], %31 {strides = array<i32>} : memref<8x128xf32, #tpu.memory_space<vmem>>, vector<8x128xf32>,
    %c0_24 = arith.constant 0 : index
    %c0_25 = arith.constant 0 : index
    %33 = vector.load %arg10[%c0_24, %c0_25] : memref<8x128xf32, #tpu.memory_space<vmem>>, vector<8x128xf32>
    %34 = arith.mulf %14, %14 : vector<16x128xf32>
    %35 = vector.shape_cast %34 : vector<16x128xf32> to vector<2x8x128xf32>
    %cst_26 = arith.constant dense<0.000000e+00> : vector<8x128xf32>
    %36 = vector.multi_reduction <add>, %35, %cst_26 [0] : vector<2x8x128xf32> to vector<8x128xf32>
    %37 = arith.addf %33, %36 : vector<8x128xf32>
    %c0_27 = arith.constant 0 : index
    %c0_28 = arith.constant 0 : index
    %38 = vector.load %arg10[%c0_27, %c0_28] : memref<8x128xf32, #tpu.memory_space<vmem>>, vector<8x128xf32>
    tpu.vector_store %arg10[%c0_27, %c0_28], %37 {strides = array<i32>} : memref<8x128xf32, #tpu.memory_space<vmem>>, vector<8x128xf32>,
    %c0_i32_29 = arith.constant 0 : i32
    %39 = arith.cmpi eq, %arg1, %c0_i32_29 : i32
    %40 = arith.extui %39 : i1 to i32
    %c0_i32_30 = arith.constant 0 : i32
    %41 = arith.cmpi ne, %40, %c0_i32_30 : i32
    scf.if %41 {
      %c0_31 = arith.constant 0 : index
      %c0_32 = arith.constant 0 : index
      %42 = vector.load %arg7[%c0_31, %c0_32] : memref<8x128xf32, #tpu.memory_space<vmem>>, vector<8x128xf32>
      %43 = vector.shape_cast %42 : vector<8x128xf32> to vector<1x8x128xf32>
      %cst_33 = arith.constant dense<0.000000e+00> : vector<1xf32>
      %44 = vector.multi_reduction <add>, %43, %cst_33 [1, 2] : vector<1x8x128xf32> to vector<1xf32>
      %45 = vector.shape_cast %44 : vector<1xf32> to vector<1x1x1xf32>
      %46 = vector.extract %45[0, 0, 0] : f32 from vector<1x1x1xf32>
      %c0_34 = arith.constant 0 : index
      %c0_35 = arith.constant 0 : index
      %47 = memref.load %arg6[%c0_34, %c0_35] : memref<1x4xf32, #tpu.memory_space<smem>>
      memref.store %46, %arg6[%c0_34, %c0_35] : memref<1x4xf32, #tpu.memory_space<smem>>
      %c0_36 = arith.constant 0 : index
      %c0_37 = arith.constant 0 : index
      %48 = vector.load %arg8[%c0_36, %c0_37] : memref<8x128xf32, #tpu.memory_space<vmem>>, vector<8x128xf32>
      %49 = vector.shape_cast %48 : vector<8x128xf32> to vector<1x8x128xf32>
      %cst_38 = arith.constant dense<0.000000e+00> : vector<1xf32>
      %50 = vector.multi_reduction <add>, %49, %cst_38 [1, 2] : vector<1x8x128xf32> to vector<1xf32>
      %51 = vector.shape_cast %50 : vector<1xf32> to vector<1x1x1xf32>
      %52 = vector.extract %51[0, 0, 0] : f32 from vector<1x1x1xf32>
      %c0_39 = arith.constant 0 : index
      %c1 = arith.constant 1 : index
      %53 = memref.load %arg6[%c0_39, %c1] : memref<1x4xf32, #tpu.memory_space<smem>>
      memref.store %52, %arg6[%c0_39, %c1] : memref<1x4xf32, #tpu.memory_space<smem>>
      %c0_40 = arith.constant 0 : index
      %c0_41 = arith.constant 0 : index
      %54 = vector.load %arg9[%c0_40, %c0_41] : memref<8x128xf32, #tpu.memory_space<vmem>>, vector<8x128xf32>
      %55 = vector.shape_cast %54 : vector<8x128xf32> to vector<1x8x128xf32>
      %cst_42 = arith.constant dense<0.000000e+00> : vector<1xf32>
      %56 = vector.multi_reduction <add>, %55, %cst_42 [1, 2] : vector<1x8x128xf32> to vector<1xf32>
      %57 = vector.shape_cast %56 : vector<1xf32> to vector<1x1x1xf32>
      %58 = vector.extract %57[0, 0, 0] : f32 from vector<1x1x1xf32>
      %c0_43 = arith.constant 0 : index
      %c2 = arith.constant 2 : index
      %59 = memref.load %arg6[%c0_43, %c2] : memref<1x4xf32, #tpu.memory_space<smem>>
      memref.store %58, %arg6[%c0_43, %c2] : memref<1x4xf32, #tpu.memory_space<smem>>
      %c0_44 = arith.constant 0 : index
      %c0_45 = arith.constant 0 : index
      %60 = vector.load %arg10[%c0_44, %c0_45] : memref<8x128xf32, #tpu.memory_space<vmem>>, vector<8x128xf32>
      %61 = vector.shape_cast %60 : vector<8x128xf32> to vector<1x8x128xf32>
      %cst_46 = arith.constant dense<0.000000e+00> : vector<1xf32>
      %62 = vector.multi_reduction <add>, %61, %cst_46 [1, 2] : vector<1x8x128xf32> to vector<1xf32>
      %63 = vector.shape_cast %62 : vector<1xf32> to vector<1x1x1xf32>
      %64 = vector.extract %63[0, 0, 0] : f32 from vector<1x1x1xf32>
      %c0_47 = arith.constant 0 : index
      %c3 = arith.constant 3 : index
      %65 = memref.load %arg6[%c0_47, %c3] : memref<1x4xf32, #tpu.memory_space<smem>>
      memref.store %64, %arg6[%c0_47, %c3] : memref<1x4xf32, #tpu.memory_space<smem>>
    } else {
    }
    return
  }
  func.func @transform_0(%arg0: i32, %arg1: i32) -> (i32, i32) {
    %c1_i32 = arith.constant 1 : i32
    %0 = arith.muli %arg0, %c1_i32 : i32
    %1 = arith.addi %0, %arg1 : i32
    %c0_i32 = arith.constant 0 : i32
    %2 = arith.minsi %1, %c0_i32 : i32
    %c0_i32_0 = arith.constant 0 : i32
    %c0_i32_1 = arith.constant 0 : i32
    return %2, %c0_i32_0 : i32, i32
  }
  func.func @transform_1(%arg0: i32, %arg1: i32) -> (i32, i32) {
    %c1_i32 = arith.constant 1 : i32
    %0 = arith.muli %arg0, %c1_i32 : i32
    %1 = arith.addi %0, %arg1 : i32
    %c0_i32 = arith.constant 0 : i32
    %2 = arith.minsi %1, %c0_i32 : i32
    %c0_i32_0 = arith.constant 0 : i32
    %c0_i32_1 = arith.constant 0 : i32
    return %2, %c0_i32_0 : i32, i32
  }
  func.func @transform_2(%arg0: i32, %arg1: i32) -> (i32, i32) {
    %c1_i32 = arith.constant 1 : i32
    %0 = arith.muli %arg0, %c1_i32 : i32
    %1 = arith.addi %0, %arg1 : i32
    %c0_i32 = arith.constant 0 : i32
    %2 = arith.minsi %1, %c0_i32 : i32
    %c0_i32_0 = arith.constant 0 : i32
    %c0_i32_1 = arith.constant 0 : i32
    return %2, %c0_i32_0 : i32, i32
  }
  func.func @transform_3(%arg0: i32, %arg1: i32) -> (i32, i32) {
    %c1_i32 = arith.constant 1 : i32
    %0 = arith.muli %arg0, %c1_i32 : i32
    %1 = arith.addi %0, %arg1 : i32
    %c0_i32 = arith.constant 0 : i32
    %2 = arith.minsi %1, %c0_i32 : i32
    %c0_i32_0 = arith.constant 0 : i32
    %c0_i32_1 = arith.constant 0 : i32
    return %2, %c0_i32_0 : i32, i32
  }
  func.func @transform_4(%arg0: i32, %arg1: i32) -> (i32, i32) {
    %c0_i32 = arith.constant 0 : i32
    %c0_i32_0 = arith.constant 0 : i32
    return %arg0, %c0_i32 : i32, i32
  }
}

</mosaic_0001>

<bundles_post_ra>
// kernel: _loss_sums.1
= control target key start
LH: loop header
LB: loop body
LE: loop exit
PB: predicated region body
PF: predicated region fallthrough
CT: control target
= control target key end

     0   :  { %s366_s0 = inlined_call_operand.vmem [shape: f32[16,128], index: 0, kind: input, shape index: {}]   ;;  %s367_s1 = inlined_call_operand.vmem [shape: f32[16,128], index: 1, kind: input, shape index: {}]   ;;  %s368_s2 = inlined_call_operand.vmem [shape: f32[16,128], index: 2, kind: input, shape index: {}]   ;;  %s369_s3 = inlined_call_operand.vmem [shape: f32[16,128], index: 3, kind: input, shape index: {}]   ;;  %s370_s4 = inlined_call_operand.hbm [shape: f32[1,4], index: 4, kind: output, shape index: {}]  }
   0x1   :  { %v160_v0 = vld [vmem:[%s369_s3] sm:$0xff]  ;;  %v161_v1 = vld [vmem:[%s369_s3 + $0x8] sm:$0xff] }
   0x2   :  { %v154_v2 = vld [vmem:[%s366_s0] sm:$0xff]  ;;  %v187_v3 = vmul.f32 %v160_v0, %v160_v0  ;;  %v188_v4 = vmul.f32 %v161_v1, %v161_v1  ;;  %v155_v5 = vld [vmem:[%s366_s0 + $0x8] sm:$0xff] }
   0x3   :  { %v156_v6 = vld [vmem:[%s367_s1] sm:$0xff]  ;;  %v157_v7 = vld [vmem:[%s367_s1 + $0x8] sm:$0xff] }
   0x4   :  { %v158_v8 = vld [vmem:[%s368_s2] sm:$0xff]  ;;  %v159_v9 = vld [vmem:[%s368_s2 + $0x8] sm:$0xff]  ;;  %v162_v10 = vsub.f32 %v154_v2, %v156_v6  ;;  %v163_v11 = vsub.f32 %v155_v5, %v157_v7 }
   0x5   :  { %9 = vsyncpa [#allocation7], 0  ;;  %v189_v12 = vadd.f32 %v188_v4, %v187_v3  ;;  %v168_v13 = vmul.f32 2.0, %v158_v8  ;;  %v169_v14 = vmul.f32 2.0, %v159_v9  ;;  %s254_s30 = sshll.u32 %s370_s4, 4  ;;  %s313_s8 = smov [#allocation6]   ;;  %s255_s30 = int_to_ptr.hbm [resolvable:$true] %s254_s30 }
   0x6   :  { %v164_v15 = vmul.f32 %v162_v10, %v158_v8  ;;  %v165_v16 = vmul.f32 %v163_v11, %v159_v9 }
   0x7   :  { %226 = vadd.xlane.f32.xlu1 %v189_v12  ;;  %v288_v17 = vadd.f32 -1.0, %v168_v13  ;;  %v289_v18 = vadd.f32 -1.0, %v169_v14 }
   0x8   :  { %v175_v19 = vmul.f32 %v164_v15, %v164_v15  ;;  %v176_v20 = vmul.f32 %v165_v16, %v165_v16  ;;  %v166_v21 = vsub.f32 %v162_v10, %v164_v15  ;;  %v167_v22 = vsub.f32 %v163_v11, %v165_v16 }
   0x9   :  { %v172_v23 = vmul.f32 %v288_v17, %v154_v2  ;;  %v173_v24 = vmul.f32 %v289_v18, %v155_v5 }
   0xa   :  { %v177_v25 = vadd.f32 %v176_v20, %v175_v19  ;;  %v181_v28 = vmul.f32 %v166_v21, %v166_v21  ;;  %v182_v29 = vmul.f32 %v167_v22, %v167_v22 }
   0xb   :  { %v193_v26 = vmul.f32 %v172_v23, %v172_v23  ;;  %v194_v27 = vmul.f32 %v173_v24, %v173_v24 }
   0xc   :  { %202 = vadd.xlane.f32.xlu0 %v177_v25  ;;  %v183_v31 = vadd.f32 %v182_v29, %v181_v28 }
   0xd   :  { %v195_v30 = vadd.f32 %v194_v27, %v193_v26 }
   0xf   :  { %238 = vadd.xlane.f32.xlu1 %v195_v30 }
  0x14   :  { %214 = vadd.xlane.f32.xlu0 %v183_v31 }
  0x7a   :  { %v227_v32 = vpop.xlane.xlu1 %226 }
  0x7b   :  { %v228_v33 = vrot.slane %v227_v32, 4 }
  0x7d   :  { %v229_v38 = vadd.f32 %v228_v33, %v227_v32 }
  0x7f   :  { %v203_v34 = vpop.xlane.xlu0 %202  ;;  %v230_v43 = vrot.slane %v229_v38, 2 }
  0x80   :  { %v204_v35 = vrot.slane %v203_v34, 4 }
  0x81   :  { %v231_v50 = vadd.f32 %v230_v43, %v229_v38 }
  0x82   :  { %v205_v36 = vadd.f32 %v204_v35, %v203_v34  ;;  %v239_v37 = vpop.xlane.xlu1 %238 }
  0x83   :  { %v240_v39 = vrot.slane %v239_v37, 4  ;;  %v232_v54 = vrot.slane %v231_v50, 1 }
  0x84   :  { %v206_v40 = vrot.slane %v205_v36, 2 }
  0x85   :  { %v241_v41 = vadd.f32 %v240_v39, %v239_v37  ;;  %v233_v58 = vadd.f32 %v232_v54, %v231_v50 }
  0x86   :  { %v207_v42 = vadd.f32 %v206_v40, %v205_v36 }
  0x87   :  { %v215_v44 = vpop.xlane.xlu0 %214  ;;  %v242_v45 = vrot.slane %v241_v41, 2 }
  0x88   :  { %v216_v46 = vrot.slane %v215_v44, 4  ;;  %v208_v47 = vrot.slane %v207_v42, 1 }
  0x89   :  { %v243_v51 = vadd.f32 %v242_v45, %v241_v41 }
  0x8a   :  { %v217_v48 = vadd.f32 %v216_v46, %v215_v44  ;;  %v209_v49 = vadd.f32 %v208_v47, %v207_v42 }
  0x8b   :  { %v244_v56 = vrot.slane %v243_v51, 1 }
  0x8c   :  { %v218_v52 = vrot.slane %v217_v48, 2  ;;  %290 = vpush %v209_v49 }
  0x8d   :  { %v245_v59 = vadd.f32 %v244_v56, %v243_v51 }
  0x8e   :  { %v219_v53 = vadd.f32 %v218_v52, %v217_v48 }
  0x90   :  { %v220_v55 = vrot.slane %v219_v53, 1 }
  0x92   :  { %v221_v57 = vadd.f32 %v220_v55, %v219_v53 }
  0x94   :  { %292 = vpush %v221_v57 }
  0x95   :  { %294 = vpush %v233_v58 }
  0x96   :  { %296 = vpush %v245_v59 }
  0xbd   :  { %s291_s0 = spop %290 }
  0xbe   :  { %212 = sst [smem:[#allocation6]] %s291_s0 }
  0xc5   :  { %s293_s5 = spop %292 }
  0xc6   :  { %224 = sst [smem:[#allocation6 + $0x1]] %s293_s5  ;;  %s295_s6 = spop %294 }
  0xc7   :  { %236 = sst [smem:[#allocation6 + $0x2]] %s295_s6  ;;  %s297_s7 = spop %296 }
  0xc8   :  { %248 = sst [smem:[#allocation6 + $0x3]] %s297_s7 }
  0xc9   :  { %257 = dma.smem_to_hbm %s313_s8, 16, %s255_s30, [#allocation7]  }
  0xca   :  { %311 = dma.done.wait [#allocation7], 16  }
  0xcb   :  { %312 = vsyncadd [#allocation7], 4294967280 }
  0xcc   :  { %262 = sfence }
  0xcd   :  { %263 = vsyncpa [#allocation7], 1 }

</bundles_post_ra>
